<compile_context>
chip_gen: v7x
topology: tpu7x:2x2x1
jax: 0.10.0
libtpu: 0.0.40
codegen_flags: <defaults>
</compile_context>

<pallas_src>
import jax
import jax.numpy as jnp
from jax.experimental import pallas as pl
from jax.experimental.pallas import tpu as pltpu


def _nnet_kernel(xt_ref, w1_ref, b1_ref, w2_ref, b2_ref, w3_ref, b3_ref, ot_ref):
    # xt_ref: [n_in, TB]   (batch on lanes)
    # wK_ref: [out, in]    (PyTorch Linear layout)   bK_ref: [out, 1] f32
    # layer 1: [H, n_in] @ [n_in, TB] -> [H, TB], bias lane-broadcast, ReLU
    h1 = jnp.dot(w1_ref[...], xt_ref[...], preferred_element_type=jnp.float32)
    h1 = jnp.maximum(h1 + b1_ref[...], 0.0)
    # layer 2: [H, H] @ [H, TB] -> [H, TB]
    # NOTE: in the bf16 path the post-ReLU f32 activations are cast back to
    # bf16 before layers 2/3; error compounds slightly (tests use 5e-2 tol).
    h2 = jnp.dot(w2_ref[...], h1.astype(w2_ref.dtype),
                 preferred_element_type=jnp.float32)
    h2 = jnp.maximum(h2 + b2_ref[...], 0.0)
    # layer 3: [n_out, H] @ [H, TB] -> [n_out, TB]  (lane-dense output tile)
    out = jnp.dot(w3_ref[...], h2.astype(w3_ref.dtype),
                  preferred_element_type=jnp.float32)
    ot_ref[...] = (out + b3_ref[...]).astype(ot_ref.dtype)


def _choose_tile(B, block_b):
    """Pick the lane-axis batch tile.

    - B <= 256: single full-extent tile (last dim == full array dim is legal).
    - otherwise: a multiple of 128, capped at block_b, and sized so the grid
      has >= 2 steps (keeps both v7x TensorCores busy via "parallel").
    """
    if B <= 256:
        return B
    half = pl.cdiv(B, 2)
    half = pl.cdiv(half, 128) * 128
    return min(block_b, half)


def nnet_forward_t(xt, params, *, block_b=16384, compute_dtype=jnp.bfloat16,
                   out_dtype=jnp.float32):
    """Transposed-interface forward (the fast path — no wrapper transposes).

    xt:     [n_in, B] activations (any float dtype; cast to compute_dtype).
    params: PyTorch-layout weights wK: (out, in) and biases bK: (out, 1).
    returns [n_out, B] in out_dtype.
    """
    assert block_b % 128 == 0, "block_b must be a multiple of 128"

    w1 = params["w1"].astype(compute_dtype)
    w2 = params["w2"].astype(compute_dtype)
    w3 = params["w3"].astype(compute_dtype)
    # Biases stay f32: they are added to the f32 accumulator.
    b1 = params["b1"].astype(jnp.float32)
    b2 = params["b2"].astype(jnp.float32)
    b3 = params["b3"].astype(jnp.float32)

    n_in, B = xt.shape
    n_hidden = w1.shape[0]
    n_out = w3.shape[0]
    xt = xt.astype(compute_dtype)

    tb = _choose_tile(B, block_b)
    grid = (pl.cdiv(B, tb),)   # ragged last block handled by Pallas (no pad)

    # Weights/biases: full-array blocks, constant index map -> resident in VMEM.
    const = lambda a: pl.BlockSpec(a.shape, lambda i: (0, 0))

    # VMEM budget per grid step (double-buffered x/out tiles + h1/h2 temps),
    # 2x headroom, capped at 64 MiB so the limit is valid on v7x as well.
    in_dsize = jnp.dtype(compute_dtype).itemsize
    out_dsize = jnp.dtype(out_dtype).itemsize
    per_elem = 2 * n_in * in_dsize + 2 * n_out * out_dsize + 2 * n_hidden * 4
    w_bytes = sum(int(a.size) * a.dtype.itemsize
                  for a in (w1, b1, w2, b2, w3, b3))
    vmem_limit = int(min(max(2 * (per_elem * tb + w_bytes), 8 << 20), 64 << 20))

    cost = pl.CostEstimate(
        flops=2 * B * (n_in * n_hidden + n_hidden * n_hidden + n_hidden * n_out),
        transcendentals=0,
        bytes_accessed=B * (n_in * in_dsize + n_out * out_dsize) + w_bytes,
    )

    out_t = pl.pallas_call(
        _nnet_kernel,
        out_shape=jax.ShapeDtypeStruct((n_out, B), out_dtype),
        grid=grid,
        in_specs=[
            pl.BlockSpec((n_in, tb), lambda i: (0, i)),   # x^T batch tile
            const(w1), const(b1),
            const(w2), const(b2),
            const(w3), const(b3),
        ],
        out_specs=pl.BlockSpec((n_out, tb), lambda i: (0, i)),  # lane-dense
        compiler_params=pltpu.CompilerParams(
            dimension_semantics=("parallel",),
            vmem_limit_bytes=vmem_limit),
        cost_estimate=cost,
    )(xt, w1, b1, w2, b2, w3, b3)
    return out_t


def nnet_forward(x, params, *, block_b=16384, compute_dtype=jnp.bfloat16,
                 out_dtype=jnp.float32):
    """Module-layout convenience wrapper: x [B, n_in] -> [B, n_out].

    The interface transposes here are cheap 2-D layout ops that fuse into the
    adjacent cast / consumer; for zero extra HBM passes use nnet_forward_t.
    """
    out_t = nnet_forward_t(x.T, params, block_b=block_b,
                           compute_dtype=compute_dtype, out_dtype=out_dtype)
    return out_t.T


def init_params(key, n_in, n_out, n_hidden=32):
    """Deterministic PyTorch-Linear-style init, U[-1/sqrt(fan_in), 1/sqrt(fan_in)].
    Weights in native PyTorch (out, in) layout; biases as (out, 1)."""
    ks = jax.random.split(key, 6)

    def lin(kw, kb, fan_in, fan_out):
        bound = 1.0 / (fan_in ** 0.5)
        w = jax.random.uniform(kw, (fan_out, fan_in), jnp.float32, -bound, bound)
        b = jax.random.uniform(kb, (fan_out, 1), jnp.float32, -bound, bound)
        return w, b

    w1, b1 = lin(ks[0], ks[1], n_in, n_hidden)
    w2, b2 = lin(ks[2], ks[3], n_hidden, n_hidden)
    w3, b3 = lin(ks[4], ks[5], n_hidden, n_out)
    return {"w1": w1, "b1": b1, "w2": w2, "b2": b2, "w3": w3, "b3": b3}


def nnet_reference(x, p):
    """Pure-JAX reference of the PyTorch forward (nonlinear branch only)."""
    h1 = jnp.maximum(x @ p["w1"].T + p["b1"][:, 0], 0.0)
    h2 = jnp.maximum(h1 @ p["w2"].T + p["b2"][:, 0], 0.0)
    return h2 @ p["w3"].T + p["b3"][:, 0]


if __name__ == "__main__":
    n_in, n_out, n_hidden = 16, 8, 32

    key = jax.random.PRNGKey(0)
    k_p, k_x1, k_x2 = jax.random.split(key, 3)
    params = init_params(k_p, n_in, n_out, n_hidden)

    # Small batch: single full-extent tile, f32 path -> tight check.
    x_small = jax.random.normal(k_x1, (8, n_in), jnp.float32)
    out_small = jax.block_until_ready(
        nnet_forward(x_small, params, compute_dtype=jnp.float32))
    ref_small = nnet_reference(x_small, params)
    assert out_small.shape == (8, n_out)
    assert jnp.allclose(out_small, ref_small, atol=1e-5, rtol=1e-5)

    # Ragged multi-tile grid (2 steps, partial last block, no jnp.pad),
    # default bf16 compute path.
    x_big = jax.random.normal(k_x2, (600, n_in), jnp.float32)
    out_bf16 = jax.block_until_ready(nnet_forward(x_big, params))
    ref_big = nnet_reference(x_big, params)
    assert out_bf16.shape == (600, n_out)
    assert jnp.allclose(out_bf16, ref_big, atol=5e-2, rtol=5e-2)

    # Same ragged grid, f32 compute path -> tight check.
    out_f32 = jax.block_until_ready(
        nnet_forward(x_big, params, compute_dtype=jnp.float32))
    assert jnp.allclose(out_f32, ref_big, atol=1e-4, rtol=1e-4)

    # Transposed-interface entry point (zero wrapper-side transposes).
    out_t = jax.block_until_ready(nnet_forward_t(x_big.T, params))
    assert out_t.shape == (n_out, 600)
    assert jnp.allclose(out_t.T, ref_big, atol=5e-2, rtol=5e-2)

    print("KERNEL_OK")
</pallas_src>

<mosaic_0001>
module attributes {stable_mosaic.version = 11 : i64} {
  func.func @_nnet_kernel(%arg0: i32, %arg1: memref<16x8xf32, #tpu.memory_space<vmem>>, %arg2: memref<32x16xf32, #tpu.memory_space<vmem>>, %arg3: memref<32x1xf32, #tpu.memory_space<vmem>>, %arg4: memref<32x32xf32, #tpu.memory_space<vmem>>, %arg5: memref<32x1xf32, #tpu.memory_space<vmem>>, %arg6: memref<8x32xf32, #tpu.memory_space<vmem>>, %arg7: memref<8x1xf32, #tpu.memory_space<vmem>>, %arg8: memref<8x8xf32, #tpu.memory_space<vmem>>) attributes {dimension_semantics = [#tpu.dimension_semantics<parallel>], iteration_bounds = array<i64: 1>, scalar_prefetch = 0 : i64, scratch_operands = 0 : i64, tpu.core_type = #tpu.core_type<tc>, window_params = [{transform_indices = @transform_0, window_bounds = array<i64: 16, 8>}, {pipeline_mode = #tpu.pipeline_mode<synchronous>, transform_indices = @transform_1, window_bounds = array<i64: 32, 16>}, {pipeline_mode = #tpu.pipeline_mode<synchronous>, transform_indices = @transform_2, window_bounds = array<i64: 32, 1>}, {pipeline_mode = #tpu.pipeline_mode<synchronous>, transform_indices = @transform_3, window_bounds = array<i64: 32, 32>}, {pipeline_mode = #tpu.pipeline_mode<synchronous>, transform_indices = @transform_4, window_bounds = array<i64: 32, 1>}, {pipeline_mode = #tpu.pipeline_mode<synchronous>, transform_indices = @transform_5, window_bounds = array<i64: 8, 32>}, {pipeline_mode = #tpu.pipeline_mode<synchronous>, transform_indices = @transform_6, window_bounds = array<i64: 8, 1>}, {transform_indices = @transform_7, window_bounds = array<i64: 8, 8>}]} {
    %c0 = arith.constant 0 : index
    %c0_0 = arith.constant 0 : index
    %0 = vector.load %arg2[%c0, %c0_0] : memref<32x16xf32, #tpu.memory_space<vmem>>, vector<32x16xf32>
    %c0_1 = arith.constant 0 : index
    %c0_2 = arith.constant 0 : index
    %1 = vector.load %arg1[%c0_1, %c0_2] : memref<16x8xf32, #tpu.memory_space<vmem>>, vector<16x8xf32>
    %cst = arith.constant dense<0.000000e+00> : vector<32x8xf32>
    %2 = tpu.matmul %0, %1, %cst {dimension_numbers = #tpu.dot_dimension_numbers<[1], [0], [0], [1], [0, 0, 1, 1], [], []>} : vector<32x16xf32>, vector<16x8xf32>, vector<32x8xf32> -> vector<32x8xf32>
    %c0_3 = arith.constant 0 : index
    %c0_4 = arith.constant 0 : index
    %3 = vector.load %arg3[%c0_3, %c0_4] : memref<32x1xf32, #tpu.memory_space<vmem>>, vector<32x1xf32>
    %4 = vector.broadcast %3 : vector<32x1xf32> to vector<32x8xf32>
    %5 = arith.addf %2, %4 : vector<32x8xf32>
    %cst_5 = arith.constant 0.000000e+00 : f32
    %6 = vector.broadcast %cst_5 : f32 to vector<32x8xf32>
    %7 = arith.maximumf %5, %6 : vector<32x8xf32>
    %c0_6 = arith.constant 0 : index
    %c0_7 = arith.constant 0 : index
    %8 = vector.load %arg4[%c0_6, %c0_7] : memref<32x32xf32, #tpu.memory_space<vmem>>, vector<32x32xf32>
    %cst_8 = arith.constant dense<0.000000e+00> : vector<32x8xf32>
    %9 = tpu.matmul %8, %7, %cst_8 {dimension_numbers = #tpu.dot_dimension_numbers<[1], [0], [0], [1], [0, 0, 1, 1], [], []>} : vector<32x32xf32>, vector<32x8xf32>, vector<32x8xf32> -> vector<32x8xf32>
    %c0_9 = arith.constant 0 : index
    %c0_10 = arith.constant 0 : index
    %10 = vector.load %arg5[%c0_9, %c0_10] : memref<32x1xf32, #tpu.memory_space<vmem>>, vector<32x1xf32>
    %11 = vector.broadcast %10 : vector<32x1xf32> to vector<32x8xf32>
    %12 = arith.addf %9, %11 : vector<32x8xf32>
    %cst_11 = arith.constant 0.000000e+00 : f32
    %13 = vector.broadcast %cst_11 : f32 to vector<32x8xf32>
    %14 = arith.maximumf %12, %13 : vector<32x8xf32>
    %c0_12 = arith.constant 0 : index
    %c0_13 = arith.constant 0 : index
    %15 = vector.load %arg6[%c0_12, %c0_13] : memref<8x32xf32, #tpu.memory_space<vmem>>, vector<8x32xf32>
    %cst_14 = arith.constant dense<0.000000e+00> : vector<8x8xf32>
    %16 = tpu.matmul %15, %14, %cst_14 {dimension_numbers = #tpu.dot_dimension_numbers<[1], [0], [0], [1], [0, 0, 1, 1], [], []>} : vector<8x32xf32>, vector<32x8xf32>, vector<8x8xf32> -> vector<8x8xf32>
    %c0_15 = arith.constant 0 : index
    %c0_16 = arith.constant 0 : index
    %17 = vector.load %arg7[%c0_15, %c0_16] : memref<8x1xf32, #tpu.memory_space<vmem>>, vector<8x1xf32>
    %18 = vector.broadcast %17 : vector<8x1xf32> to vector<8x8xf32>
    %19 = arith.addf %16, %18 : vector<8x8xf32>
    %c0_17 = arith.constant 0 : index
    %c0_18 = arith.constant 0 : index
    %20 = vector.load %arg8[%c0_17, %c0_18] : memref<8x8xf32, #tpu.memory_space<vmem>>, vector<8x8xf32>
    tpu.vector_store %arg8[%c0_17, %c0_18], %19 {strides = array<i32>} : memref<8x8xf32, #tpu.memory_space<vmem>>, vector<8x8xf32>,
    return
  }
  func.func @transform_0(%arg0: i32) -> (i32, i32) {
    %c0_i32 = arith.constant 0 : i32
    %c0_i32_0 = arith.constant 0 : i32
    return %c0_i32, %arg0 : i32, i32
  }
  func.func @transform_1(%arg0: i32) -> (i32, i32) {
    %c0_i32 = arith.constant 0 : i32
    %c0_i32_0 = arith.constant 0 : i32
    %c0_i32_1 = arith.constant 0 : i32
    return %c0_i32, %c0_i32_0 : i32, i32
  }
  func.func @transform_2(%arg0: i32) -> (i32, i32) {
    %c0_i32 = arith.constant 0 : i32
    %c0_i32_0 = arith.constant 0 : i32
    %c0_i32_1 = arith.constant 0 : i32
    return %c0_i32, %c0_i32_0 : i32, i32
  }
  func.func @transform_3(%arg0: i32) -> (i32, i32) {
    %c0_i32 = arith.constant 0 : i32
    %c0_i32_0 = arith.constant 0 : i32
    %c0_i32_1 = arith.constant 0 : i32
    return %c0_i32, %c0_i32_0 : i32, i32
  }
  func.func @transform_4(%arg0: i32) -> (i32, i32) {
    %c0_i32 = arith.constant 0 : i32
    %c0_i32_0 = arith.constant 0 : i32
    %c0_i32_1 = arith.constant 0 : i32
    return %c0_i32, %c0_i32_0 : i32, i32
  }
  func.func @transform_5(%arg0: i32) -> (i32, i32) {
    %c0_i32 = arith.constant 0 : i32
    %c0_i32_0 = arith.constant 0 : i32
    %c0_i32_1 = arith.constant 0 : i32
    return %c0_i32, %c0_i32_0 : i32, i32
  }
  func.func @transform_6(%arg0: i32) -> (i32, i32) {
    %c0_i32 = arith.constant 0 : i32
    %c0_i32_0 = arith.constant 0 : i32
    %c0_i32_1 = arith.constant 0 : i32
    return %c0_i32, %c0_i32_0 : i32, i32
  }
  func.func @transform_7(%arg0: i32) -> (i32, i32) {
    %c0_i32 = arith.constant 0 : i32
    %c0_i32_0 = arith.constant 0 : i32
    return %c0_i32, %arg0 : i32, i32
  }
}

</mosaic_0001>

<bundles_post_ra>
// kernel: tpu_custom_call.1
= control target key start
LH: loop header
LB: loop body
LE: loop exit
PB: predicated region body
PF: predicated region fallthrough
CT: control target
= control target key end

     0   :  { %vm57_vm0 = vcmask 130048   ;;  %v497_v4 = vmov 0   ;;  %s623_s0 = inlined_call_operand.vmem [shape: f32[16,8], index: 0, kind: input, shape index: {}]   ;;  %s624_s1 = inlined_call_operand.vmem [shape: f32[32,16], index: 1, kind: input, shape index: {}]   ;;  %s625_s2 = inlined_call_operand.vmem [shape: f32[32,1], index: 2, kind: input, shape index: {}]   ;;  %s626_s3 = inlined_call_operand.vmem [shape: f32[32,32], index: 3, kind: input, shape index: {}]   ;;  %s627_s4 = inlined_call_operand.vmem [shape: f32[32,1], index: 4, kind: input, shape index: {}]   ;;  %s628_s5 = inlined_call_operand.vmem [shape: f32[8,32], index: 5, kind: input, shape index: {}]   ;;  %s629_s6 = inlined_call_operand.vmem [shape: f32[8,1], index: 6, kind: input, shape index: {}]   ;;  %s630_s7 = inlined_call_operand.hbm [shape: f32[8,8], index: 7, kind: output, shape index: {}]  }
   0x1   :  { %v31_v0 = vld [vmem:[%s623_s0] sm:$0xff]  ;;  %v32_v1 = vld [vmem:[%s623_s0 + $0x8] sm:$0xff]  ;;  %471 = vset.pattern.permute.xlu0 %v497_v4  ;;  %472 = vset.pattern.permute.xlu1 %v497_v4  ;;  %v35_v6 = vld [vmem:[%s625_s2 + $0x10] sm:$0xff] }
   0x2   :  { %v27_v2 = vld [vmem:[%s624_s1] sm:$0xff]  ;;  %v448_v3 = vpack.c.bf16 %v32_v1, %v31_v0  ;;  %v28_v7 = vld [vmem:[%s624_s1 + $0x8] sm:$0xff]  ;;  %49 = vperm.xlu1 %472, %v35_v6   ;;  %v29_v9 = vld [vmem:[%s624_s1 + $0x10] sm:$0xff] }
   0x3   :  { %417 = vmatprep.mubr.msk.f32.mxu0 %vm57_vm0, %v27_v2  ;;  %v33_v5 = vld [vmem:[%s625_s2] sm:$0xff]  ;;  %v34_v8 = vld [vmem:[%s625_s2 + $0x8] sm:$0xff]  ;;  %v36_v10 = vld [vmem:[%s625_s2 + $0x18] sm:$0xff] }
   0x4   :  { %449 = vmatprep.subr.bf16.mxu0 %v448_v3  ;;  %39 = vperm.xlu0 %471, %v33_v5  }
   0x5   :  { %451 = vmatpush3.bf16.msra.mxu0 %v448_v3 }
   0x6   :  { %12 = vsyncpa [#allocation3], 0  ;;  %v30_v11 = vld [vmem:[%s624_s1 + $0x18] sm:$0xff]  ;;  %v163_v12 = vld [vmem:[%s627_s4] sm:$0xff]  ;;  %54 = vperm.xlu1 %472, %v36_v10   ;;  %vm187_vm1 = vcmask 261120   ;;  %v498_v39 = vmov 0.0|0.0  }
   0x7   :  { %v164_v13 = vld [vmem:[%s627_s4 + $0x8] sm:$0xff]  ;;  %v165_v14 = vld [vmem:[%s627_s4 + $0x10] sm:$0xff]  ;;  %v166_v15 = vld [vmem:[%s627_s4 + $0x18] sm:$0xff]  ;;  %460 = vmatprep.subr.bf16.mxu0 %v498_v39  ;;  %vm499_vm2 = vmmov 0   ;;  %v500_v40 = vmov 0.0   ;;  %s501_s11 = smov [#allocation2]  }
   0x8   :  { %418 = vmatmul.mubr.msk.f32.vlgmr.msra.gmra.mrb[0].mxu0 %vm57_vm0, %v28_v7  ;;  %44 = vperm.xlu0 %471, %v34_v8   ;;  %v290_v16 = vld [vmem:[%s629_s6] sm:$0xff]  ;;  %v160_v36 = vld [vmem:[%s626_s3 + $0x8] sm:$0xff]  ;;  %v161_v37 = vld [vmem:[%s626_s3 + $0x10] sm:$0xff]  ;;  %s377_s12 = sshll.u32 %s501_s11, 4  ;;  %vm369_vm3 = vcmask 64512   ;;  %s378_s12 = int_to_ptr.vmem [resolvable:$true] %s377_s12 }
   0x9   :  { %420 = vmatprep.mubr.msk.f32.mxu0 %vm57_vm0, %v29_v9  ;;  %v159_v17 = vld [vmem:[%s626_s3] sm:$0xff]  ;;  %v162_v38 = vld [vmem:[%s626_s3 + $0x18] sm:$0xff]  ;;  %s473_s13 = scalar_lea.vmem %s378_s12, 128  ;;  %p478_p1 = scmp.lt.s32.totalorder %s378_s12, %s378_s12 }
   0xa   :  { %174 = vperm.xlu1 %472, %v164_v13   ;;  %431 = vmatprep.mubr.msk.f32.mxu1 %vm187_vm1, %v159_v17  ;;  %v289_v59 = vld [vmem:[%s628_s5] sm:$0xff]  ;;  %p474_p0 = scmp.ne.s32.totalorder %s378_s12, %s473_s13  ;;  %p479_p2 = scmp.lt.s32.totalorder %s473_s13, %s473_s13 }
   0xc   :  { %421 = vmatmul.mubr.msk.f32.gmra.mrb[2].mxu0 %vm57_vm0, %v30_v11  ;;  %169 = vperm.xlu0 %471, %v163_v12   ;;  %p480_p3 = por %p479_p2, %p478_p1 }
   0xd   :  { %445 = vmatprep.mubr.msk.f32.mxu0 %vm499_vm2, %v500_v40 }
   0xe   :  { %184 = vperm.xlu1 %472, %v166_v15   ;;  %p481_p4 = pnand %p480_p3, %p474_p0 }
  0x10   :  { %179 = vperm.xlu0 %471, %v165_v14  }
  0x14   :  { %293 = vperm.xlu0 %471, %v290_v16  }
  0x81   :  { %v50_v19 = vpop.permute.xlu1 %49 }
  0x83   :  { %v40_v18 = vpop.permute.xlu0 %39 }
  0x85   :  { %v55_v26 = vpop.permute.xlu1 %54 }
  0x87   :  { %v45_v20 = vpop.permute.xlu0 %44 }
  0x89   :  { %v175_v41 = vpop.permute.xlu1 %174 }
  0x8b   :  { %v170_v42 = vpop.permute.xlu0 %169 }
  0x8d   :  { %v185_v48 = vpop.permute.xlu1 %184 }
  0x8f   :  { %v180_v51 = vpop.permute.xlu0 %179 }
  0x93   :  { %v294_v60 = vpop.permute.xlu0 %293 }
  0xdb   :  { %v419_v21 = vpop.f32.mrb[0].mxu0 }
  0xdc   :  { %v142_v22 = vadd.f32 %v419_v21, %v45_v20  ;;  %v136_v23 = vpop.f32.mrb[1].mxu0 }
  0xdd   :  { %v137_v24 = vadd.f32 %v136_v23, %v40_v18 }
  0xde   :  { %v156_v25 = vmax.f32 %v142_v22, 0.0 }
  0xdf   :  { %v155_v27 = vmax.f32 %v137_v24, 0.0  ;;  %v422_v28 = vpop.f32.mrb[2].mxu0 }
  0xe0   :  { %v152_v29 = vadd.f32 %v422_v28, %v55_v26  ;;  %v146_v30 = vpop.f32.mrb[3].mxu0 }
  0xe1   :  { %v147_v31 = vadd.f32 %v146_v30, %v50_v19  ;;  %v452_v32 = vpack.c.bf16 %v156_v25, %v155_v27 }
  0xe2   :  { %v158_v33 = vmax.f32 %v152_v29, 0.0 }
  0xe3   :  { %v157_v34 = vmax.f32 %v147_v31, 0.0  ;;  %453 = vmatprep.subr.bf16.mxu1 %v452_v32 }
  0xe4   :  { %455 = vmatpush3.bf16.msra.mxu1 %v452_v32 }
  0xe5   :  { %v456_v35 = vpack.c.bf16 %v158_v33, %v157_v34 }
  0xe7   :  { %457 = vmatprep.subr.bf16.mxu1 %v456_v35 }
  0xe8   :  { %459 = vmatpush3.bf16.msra.mxu1 %v456_v35 }
  0xeb   :  { %432 = vmatmul.mubr.msk.f32.vlgmr.msra.gmra.mrb[0].mxu1 %vm187_vm1, %v160_v36 }
  0xec   :  { %434 = vmatprep.mubr.msk.f32.mxu1 %vm187_vm1, %v161_v37 }
  0xef   :  { %435 = vmatmul.mubr.msk.f32.gmra.mrb[2].mxu1 %vm187_vm1, %v162_v38 }
 0x1be   :  { %v433_v43 = vpop.f32.mrb[0].mxu1 }
 0x1bf   :  { %v272_v44 = vadd.f32 %v433_v43, %v175_v41  ;;  %v266_v45 = vpop.f32.mrb[1].mxu1 }
 0x1c0   :  { %v267_v46 = vadd.f32 %v266_v45, %v170_v42 }
 0x1c1   :  { %v286_v47 = vmax.f32 %v272_v44, 0.0 }
 0x1c2   :  { %v285_v49 = vmax.f32 %v267_v46, 0.0  ;;  %v436_v50 = vpop.f32.mrb[2].mxu1 }
 0x1c3   :  { %v282_v52 = vadd.f32 %v436_v50, %v185_v48  ;;  %v276_v53 = vpop.f32.mrb[3].mxu1 }
 0x1c4   :  { %v461_v54 = vpack.c.bf16 %v286_v47, %v285_v49  ;;  %v277_v55 = vadd.f32 %v276_v53, %v180_v51 }
 0x1c5   :  { %v288_v56 = vmax.f32 %v282_v52, 0.0 }
 0x1c6   :  { %v287_v57 = vmax.f32 %v277_v55, 0.0  ;;  %462 = vmatpush3.bf16.msra.mxu0 %v461_v54 }
 0x1c7   :  { %463 = vmatprep.subr.bf16.mxu0 %v498_v39 }
 0x1c8   :  { %v464_v58 = vpack.c.bf16 %v288_v56, %v287_v57 }
 0x1ca   :  { %465 = vmatpush3.bf16.msra.mxu0 %v464_v58 }
 0x1cd   :  { %446 = vmatmul.mubr.msk.f32.vlgmr.msra.gmra.mrb[4].mxu0 %vm187_vm1, %v289_v59 }
 0x2a0   :  { %v365_v61 = vpop.f32.mrb[4].mxu0 }
 0x2a1   :  { %v366_v62 = vadd.f32 %v365_v61, %v294_v60  ;;  %v447_v63 = vpop.f32.mrb[5].mxu0 }
 0x2a3   :  { %370 = vst.msk [vmem:[#allocation2] sm:$0xff] %vm369_vm3, %v366_v62 }
 0x2a4   :  { %484 = shalt.err (!%p481_p4)
}
 0x2a5   :  { %s485_s15 = scalar_lea.hbm %s630_s7, 128 }
 0x2a6   :  { %p486_p5 = scmp.ne.s32.totalorder %s630_s7, %s485_s15  ;;  %p489_p6 = scmp.lt.u32.totalorder %s485_s15, %s630_s7 }
 0x2a8   :  { %p491_p7 = pnand %p489_p6, %p486_p5 }
 0x2aa   :  { %494 = shalt.err (!%p491_p7)
}
 0x2ab   :  { %380 = dma.vmem_to_hbm [thread:$0]  %s378_s12, 128, %s630_s7, [#allocation3]  }
 0x2ac   :  { %495 = dma.done.wait [#allocation3], 128  }
 0x2ad   :  { %496 = vsyncadd [#allocation3], 4294967168 }
 0x2ae   :  { %384 = vsyncpa [#allocation3], 1 }

</bundles_post_ra>
